<compile_context>
chip_gen: v7x
topology: tpu7x:2x2x1
jax: 0.10.0
libtpu: 0.0.40
codegen_flags: <defaults>
</compile_context>

<pallas_src>
import functools

import numpy as np
import jax
import jax.numpy as jnp
from jax import lax
from jax.experimental import pallas as pl
from jax.experimental.pallas import tpu as pltpu


# ---------------------------------------------------------------------------
# Kernel helpers (all shapes static, loops fully unrolled at trace time)
# ---------------------------------------------------------------------------
def _shift_rows(x, dh):
    """Zero-filled sublane shift so row h of the result holds x[h + dh - 1]."""
    H, WC = x.shape
    zero = jnp.zeros((1, WC), x.dtype)
    if dh == 0:                                        # needs x[h-1]; row 0 -> 0
        return jnp.concatenate([zero, x[:H - 1, :]], axis=0)
    return jnp.concatenate([x[1:, :], zero], axis=0)   # dh == 2: needs x[h+1]


def _shift_cols(x, dw, C):
    """Lane shift so lane w*C+ch of the result holds x[:, (w+dw-1)*C+ch].

    Uses the XLU lane rotate; the wrapped-around border column is neutralised
    by the zeroed border entries of the tiled weight slab (see wrapper)."""
    WC = x.shape[1]
    shift = ((1 - dw) * C) % WC
    if shift == 0:
        return x
    if WC % 128 == 0:
        return pltpu.roll(x, shift=shift, axis=1)      # XLU lane rotate
    return jnp.roll(x, shift, axis=1)                  # tiny level (< 128 lanes)


def _dw_level(x_ref, w_ref, y_ref, C):
    """Depthwise 3x3 conv ('SAME', stride 1) on one lane-dense (1,H,W*C) level."""
    H, WC = x_ref.shape[1], x_ref.shape[2]
    x = x_ref[0]                                       # (H, W*C) f32
    w = w_ref[...]                                     # (10, W*C), fetched once
    # Centre tap + bias seed the accumulator (no shift needed for tap 4).
    acc = x * w[4, :] + w[9, :]
    for dh in range(3):
        xr = x if dh == 1 else _shift_rows(x, dh)
        for dw in range(3):
            if dh == 1 and dw == 1:
                continue                               # already in acc
            xc = xr if dw == 1 else _shift_cols(xr, dw, C)
            acc = acc + xc * w[dh * 3 + dw, :]         # VPU FMAs
    y_ref[0] = acc.astype(y_ref.dtype)


def _pyramid_kernel(C, x2_ref, x3_ref, x4_ref, w2_ref, w3_ref, w4_ref,
                    y2_ref, y3_ref, y4_ref):
    _dw_level(x2_ref, w2_ref, y2_ref, C)
    _dw_level(x3_ref, w3_ref, y3_ref, C)
    _dw_level(x4_ref, w4_ref, y4_ref, C)


# ---------------------------------------------------------------------------
# Wrapper (layout plumbing only; all MAC work is inside the kernel)
# ---------------------------------------------------------------------------
def _make_weight_slab(w_taps, bias, W, C):
    """(9,C) taps + (C,) bias -> (10, W*C) slab; border columns pre-zeroed."""
    WC = W * C
    slab = jnp.tile(w_taps, (1, W))                    # lane w*C+ch -> tap[ch]
    keep = np.ones((9, WC), np.float32)
    keep[[0, 3, 6], :C] = 0.0                          # dw==0 taps: no w-1 at w==0
    keep[[2, 5, 8], WC - C:] = 0.0                     # dw==2 taps: no w+1 at w==W-1
    slab = slab * keep
    bias_row = jnp.tile(bias.reshape(1, C), (1, W))    # (1, W*C)
    return jnp.concatenate([slab, bias_row], axis=0)   # (10, W*C)


def spatial_feat_pyramid_dwconv(c, c_spatial_shapes, weight, bias):
    """Equivalent of SpatialFeatPyramidDWConv.forward.

    c:       (B, N2+N3+N4, C) float32 token pyramid
    weight:  (C, 1, 3, 3) PyTorch depthwise Conv2d weight
    bias:    (C,)
    returns: (B, N2+N3+N4, C)
    """
    B, N, C = c.shape
    # First entry of c_spatial_shapes is ignored, matching the PyTorch module.
    _, (H2, W2), (H3, W3), (H4, W4) = c_spatial_shapes
    shapes = ((H2, W2), (H3, W3), (H4, W4))
    i1 = H2 * W2
    i2 = i1 + H3 * W3
    offs = (0, i1, i2)
    ends = (i1, i2, N)

    # (C,1,3,3) -> (3,3,C) -> (9,C): tap row = dh*3 + dw, channel on lanes.
    w_taps = jnp.transpose(weight[:, 0, :, :], (1, 2, 0)).reshape(9, C)

    # Lane-dense (B, H, W*C) views of each level (free reshapes, tiny slices).
    xs = [c[:, a:b, :].reshape(B, H, W * C)
          for (H, W), a, b in zip(shapes, offs, ends)]
    ws = [_make_weight_slab(w_taps, bias, W, C) for (_, W) in shapes]

    grid_spec = pltpu.PrefetchScalarGridSpec(
        num_scalar_prefetch=0,
        grid=(B,),
        in_specs=(
            [pl.BlockSpec((1, H, W * C), lambda b: (b, 0, 0)) for (H, W) in shapes]
            # Constant block index -> the pipeline does not re-fetch the slabs.
            + [pl.BlockSpec((10, W * C), lambda b: (0, 0)) for (_, W) in shapes]
        ),
        out_specs=[pl.BlockSpec((1, H, W * C), lambda b: (b, 0, 0))
                   for (H, W) in shapes],
    )

    ys = pl.pallas_call(
        functools.partial(_pyramid_kernel, C),
        out_shape=tuple(jax.ShapeDtypeStruct((B, H, W * C), c.dtype)
                        for (H, W) in shapes),
        grid_spec=grid_spec,
        compiler_params=pltpu.CompilerParams(
            dimension_semantics=("parallel",)),
    )(*xs, *ws)

    # Free reshapes back to token layout + one small fused concat (~N*C*4 B).
    outs = [y.reshape(B, H * W, C) for y, (H, W) in zip(ys, shapes)]
    return jnp.concatenate(outs, axis=1)


# ---------------------------------------------------------------------------
# Pure-JAX reference (lax depthwise conv) for correctness checking
# ---------------------------------------------------------------------------
def _reference(c, c_spatial_shapes, weight, bias):
    B, _, C = c.shape
    _, (H2, W2), (H3, W3), (H4, W4) = c_spatial_shapes
    i1 = H2 * W2
    i2 = i1 + H3 * W3
    w_hwio = jnp.transpose(weight, (2, 3, 1, 0))       # (3,3,1,C)

    def run(seg, H, W):
        x = seg.reshape(B, H, W, C)
        y = lax.conv_general_dilated(
            x, w_hwio, window_strides=(1, 1), padding="SAME",
            dimension_numbers=("NHWC", "HWIO", "NHWC"),
            feature_group_count=C)
        return (y + bias).reshape(B, H * W, C)

    return jnp.concatenate(
        [run(c[:, :i1, :], H2, W2),
         run(c[:, i1:i2, :], H3, W3),
         run(c[:, i2:, :], H4, W4)], axis=1)


if __name__ == "__main__":
    key = jax.random.PRNGKey(0)
    k_c, k_w, k_b = jax.random.split(key, 3)

    B, C = 2, 32
    c_spatial_shapes = ((16, 16), (8, 8), (4, 4), (2, 2))  # first entry ignored
    N = 8 * 8 + 4 * 4 + 2 * 2  # 84 tokens

    c = jax.random.normal(k_c, (B, N, C), dtype=jnp.float32)
    weight = jax.random.normal(k_w, (C, 1, 3, 3), dtype=jnp.float32) * 0.1
    bias = jax.random.normal(k_b, (C,), dtype=jnp.float32) * 0.1

    fn = jax.jit(spatial_feat_pyramid_dwconv, static_argnums=(1,))
    out = jax.block_until_ready(fn(c, c_spatial_shapes, weight, bias))

    ref = jax.block_until_ready(_reference(c, c_spatial_shapes, weight, bias))
    assert out.shape == (B, N, C), out.shape
    assert jnp.max(jnp.abs(out - ref)) < 1e-4, float(jnp.max(jnp.abs(out - ref)))

    print("KERNEL_OK")
</pallas_src>

<mosaic_0001>
module attributes {stable_mosaic.version = 11 : i64} {
  func.func @_pyramid_kernel(%arg0: i32, %arg1: memref<1x8x256xf32, #tpu.memory_space<vmem>>, %arg2: memref<1x4x128xf32, #tpu.memory_space<vmem>>, %arg3: memref<1x2x64xf32, #tpu.memory_space<vmem>>, %arg4: memref<10x256xf32, #tpu.memory_space<vmem>>, %arg5: memref<10x128xf32, #tpu.memory_space<vmem>>, %arg6: memref<10x64xf32, #tpu.memory_space<vmem>>, %arg7: memref<1x8x256xf32, #tpu.memory_space<vmem>>, %arg8: memref<1x4x128xf32, #tpu.memory_space<vmem>>, %arg9: memref<1x2x64xf32, #tpu.memory_space<vmem>>) attributes {dimension_semantics = [#tpu.dimension_semantics<parallel>], iteration_bounds = array<i64: 2>, scalar_prefetch = 0 : i64, scratch_operands = 0 : i64, tpu.core_type = #tpu.core_type<tc>, window_params = [{transform_indices = @transform_0, window_bounds = array<i64: 1, 8, 256>}, {transform_indices = @transform_1, window_bounds = array<i64: 1, 4, 128>}, {transform_indices = @transform_2, window_bounds = array<i64: 1, 2, 64>}, {pipeline_mode = #tpu.pipeline_mode<synchronous>, transform_indices = @transform_3, window_bounds = array<i64: 10, 256>}, {pipeline_mode = #tpu.pipeline_mode<synchronous>, transform_indices = @transform_4, window_bounds = array<i64: 10, 128>}, {pipeline_mode = #tpu.pipeline_mode<synchronous>, transform_indices = @transform_5, window_bounds = array<i64: 10, 64>}, {transform_indices = @transform_6, window_bounds = array<i64: 1, 8, 256>}, {transform_indices = @transform_7, window_bounds = array<i64: 1, 4, 128>}, {transform_indices = @transform_8, window_bounds = array<i64: 1, 2, 64>}]} {
    %c0 = arith.constant 0 : index
    %c0_0 = arith.constant 0 : index
    %c0_1 = arith.constant 0 : index
    %0 = vector.load %arg1[%c0, %c0_0, %c0_1] : memref<1x8x256xf32, #tpu.memory_space<vmem>>, vector<1x8x256xf32>
    %1 = vector.shape_cast %0 : vector<1x8x256xf32> to vector<8x256xf32>
    %c0_2 = arith.constant 0 : index
    %c0_3 = arith.constant 0 : index
    %2 = vector.load %arg4[%c0_2, %c0_3] : memref<10x256xf32, #tpu.memory_space<vmem>>, vector<10x256xf32>
    %3 = vector.extract_strided_slice %2 {offsets = [4, 0], sizes = [1, 256], strides = [1, 1]} : vector<10x256xf32> to vector<1x256xf32>
    %4 = vector.shape_cast %3 : vector<1x256xf32> to vector<256xf32>
    %5 = vector.shape_cast %4 : vector<256xf32> to vector<1x256xf32>
    %6 = vector.broadcast %5 : vector<1x256xf32> to vector<8x256xf32>
    %7 = arith.mulf %1, %6 : vector<8x256xf32>
    %8 = vector.extract_strided_slice %2 {offsets = [9, 0], sizes = [1, 256], strides = [1, 1]} : vector<10x256xf32> to vector<1x256xf32>
    %9 = vector.shape_cast %8 : vector<1x256xf32> to vector<256xf32>
    %10 = vector.shape_cast %9 : vector<256xf32> to vector<1x256xf32>
    %11 = vector.broadcast %10 : vector<1x256xf32> to vector<8x256xf32>
    %12 = arith.addf %7, %11 : vector<8x256xf32>
    %cst = arith.constant 0.000000e+00 : f32
    %13 = vector.broadcast %cst : f32 to vector<1x256xf32>
    %14 = vector.extract_strided_slice %1 {offsets = [0, 0], sizes = [7, 256], strides = [1, 1]} : vector<8x256xf32> to vector<7x256xf32>
    %15 = tpu.concatenate %13, %14 in 0 : vector<1x256xf32>, vector<7x256xf32> -> vector<8x256xf32>
    %c32_i32 = arith.constant 32 : i32
    %16 = tpu.dynamic_rotate %15 by %c32_i32 dim 1 : vector<8x256xf32>, i32 -> vector<8x256xf32>
    %17 = vector.extract_strided_slice %2 {offsets = [0, 0], sizes = [1, 256], strides = [1, 1]} : vector<10x256xf32> to vector<1x256xf32>
    %18 = vector.shape_cast %17 : vector<1x256xf32> to vector<256xf32>
    %19 = vector.shape_cast %18 : vector<256xf32> to vector<1x256xf32>
    %20 = vector.broadcast %19 : vector<1x256xf32> to vector<8x256xf32>
    %21 = arith.mulf %16, %20 : vector<8x256xf32>
    %22 = arith.addf %12, %21 : vector<8x256xf32>
    %23 = vector.extract_strided_slice %2 {offsets = [1, 0], sizes = [1, 256], strides = [1, 1]} : vector<10x256xf32> to vector<1x256xf32>
    %24 = vector.shape_cast %23 : vector<1x256xf32> to vector<256xf32>
    %25 = vector.shape_cast %24 : vector<256xf32> to vector<1x256xf32>
    %26 = vector.broadcast %25 : vector<1x256xf32> to vector<8x256xf32>
    %27 = arith.mulf %15, %26 : vector<8x256xf32>
    %28 = arith.addf %22, %27 : vector<8x256xf32>
    %c224_i32 = arith.constant 224 : i32
    %29 = tpu.dynamic_rotate %15 by %c224_i32 dim 1 : vector<8x256xf32>, i32 -> vector<8x256xf32>
    %30 = vector.extract_strided_slice %2 {offsets = [2, 0], sizes = [1, 256], strides = [1, 1]} : vector<10x256xf32> to vector<1x256xf32>
    %31 = vector.shape_cast %30 : vector<1x256xf32> to vector<256xf32>
    %32 = vector.shape_cast %31 : vector<256xf32> to vector<1x256xf32>
    %33 = vector.broadcast %32 : vector<1x256xf32> to vector<8x256xf32>
    %34 = arith.mulf %29, %33 : vector<8x256xf32>
    %35 = arith.addf %28, %34 : vector<8x256xf32>
    %c32_i32_4 = arith.constant 32 : i32
    %36 = tpu.dynamic_rotate %1 by %c32_i32_4 dim 1 : vector<8x256xf32>, i32 -> vector<8x256xf32>
    %37 = vector.extract_strided_slice %2 {offsets = [3, 0], sizes = [1, 256], strides = [1, 1]} : vector<10x256xf32> to vector<1x256xf32>
    %38 = vector.shape_cast %37 : vector<1x256xf32> to vector<256xf32>
    %39 = vector.shape_cast %38 : vector<256xf32> to vector<1x256xf32>
    %40 = vector.broadcast %39 : vector<1x256xf32> to vector<8x256xf32>
    %41 = arith.mulf %36, %40 : vector<8x256xf32>
    %42 = arith.addf %35, %41 : vector<8x256xf32>
    %c224_i32_5 = arith.constant 224 : i32
    %43 = tpu.dynamic_rotate %1 by %c224_i32_5 dim 1 : vector<8x256xf32>, i32 -> vector<8x256xf32>
    %44 = vector.extract_strided_slice %2 {offsets = [5, 0], sizes = [1, 256], strides = [1, 1]} : vector<10x256xf32> to vector<1x256xf32>
    %45 = vector.shape_cast %44 : vector<1x256xf32> to vector<256xf32>
    %46 = vector.shape_cast %45 : vector<256xf32> to vector<1x256xf32>
    %47 = vector.broadcast %46 : vector<1x256xf32> to vector<8x256xf32>
    %48 = arith.mulf %43, %47 : vector<8x256xf32>
    %49 = arith.addf %42, %48 : vector<8x256xf32>
    %cst_6 = arith.constant 0.000000e+00 : f32
    %50 = vector.broadcast %cst_6 : f32 to vector<1x256xf32>
    %51 = vector.extract_strided_slice %1 {offsets = [1, 0], sizes = [7, 256], strides = [1, 1]} : vector<8x256xf32> to vector<7x256xf32>
    %52 = tpu.concatenate %51, %50 in 0 : vector<7x256xf32>, vector<1x256xf32> -> vector<8x256xf32>
    %c32_i32_7 = arith.constant 32 : i32
    %53 = tpu.dynamic_rotate %52 by %c32_i32_7 dim 1 : vector<8x256xf32>, i32 -> vector<8x256xf32>
    %54 = vector.extract_strided_slice %2 {offsets = [6, 0], sizes = [1, 256], strides = [1, 1]} : vector<10x256xf32> to vector<1x256xf32>
    %55 = vector.shape_cast %54 : vector<1x256xf32> to vector<256xf32>
    %56 = vector.shape_cast %55 : vector<256xf32> to vector<1x256xf32>
    %57 = vector.broadcast %56 : vector<1x256xf32> to vector<8x256xf32>
    %58 = arith.mulf %53, %57 : vector<8x256xf32>
    %59 = arith.addf %49, %58 : vector<8x256xf32>
    %60 = vector.extract_strided_slice %2 {offsets = [7, 0], sizes = [1, 256], strides = [1, 1]} : vector<10x256xf32> to vector<1x256xf32>
    %61 = vector.shape_cast %60 : vector<1x256xf32> to vector<256xf32>
    %62 = vector.shape_cast %61 : vector<256xf32> to vector<1x256xf32>
    %63 = vector.broadcast %62 : vector<1x256xf32> to vector<8x256xf32>
    %64 = arith.mulf %52, %63 : vector<8x256xf32>
    %65 = arith.addf %59, %64 : vector<8x256xf32>
    %c224_i32_8 = arith.constant 224 : i32
    %66 = tpu.dynamic_rotate %52 by %c224_i32_8 dim 1 : vector<8x256xf32>, i32 -> vector<8x256xf32>
    %67 = vector.extract_strided_slice %2 {offsets = [8, 0], sizes = [1, 256], strides = [1, 1]} : vector<10x256xf32> to vector<1x256xf32>
    %68 = vector.shape_cast %67 : vector<1x256xf32> to vector<256xf32>
    %69 = vector.shape_cast %68 : vector<256xf32> to vector<1x256xf32>
    %70 = vector.broadcast %69 : vector<1x256xf32> to vector<8x256xf32>
    %71 = arith.mulf %66, %70 : vector<8x256xf32>
    %72 = arith.addf %65, %71 : vector<8x256xf32>
    %c0_9 = arith.constant 0 : index
    %c0_10 = arith.constant 0 : index
    %c0_11 = arith.constant 0 : index
    %73 = vector.load %arg7[%c0_9, %c0_10, %c0_11] : memref<1x8x256xf32, #tpu.memory_space<vmem>>, vector<1x8x256xf32>
    %74 = vector.shape_cast %73 : vector<1x8x256xf32> to vector<8x256xf32>
    %75 = vector.shape_cast %72 : vector<8x256xf32> to vector<1x8x256xf32>
    tpu.vector_store %arg7[%c0_9, %c0_10, %c0_11], %75 {strides = array<i32>} : memref<1x8x256xf32, #tpu.memory_space<vmem>>, vector<1x8x256xf32>,
    %c0_12 = arith.constant 0 : index
    %c0_13 = arith.constant 0 : index
    %c0_14 = arith.constant 0 : index
    %76 = vector.load %arg2[%c0_12, %c0_13, %c0_14] : memref<1x4x128xf32, #tpu.memory_space<vmem>>, vector<1x4x128xf32>
    %77 = vector.shape_cast %76 : vector<1x4x128xf32> to vector<4x128xf32>
    %c0_15 = arith.constant 0 : index
    %c0_16 = arith.constant 0 : index
    %78 = vector.load %arg5[%c0_15, %c0_16] : memref<10x128xf32, #tpu.memory_space<vmem>>, vector<10x128xf32>
    %79 = vector.extract_strided_slice %78 {offsets = [4, 0], sizes = [1, 128], strides = [1, 1]} : vector<10x128xf32> to vector<1x128xf32>
    %80 = vector.shape_cast %79 : vector<1x128xf32> to vector<128xf32>
    %81 = vector.shape_cast %80 : vector<128xf32> to vector<1x128xf32>
    %82 = vector.broadcast %81 : vector<1x128xf32> to vector<4x128xf32>
    %83 = arith.mulf %77, %82 : vector<4x128xf32>
    %84 = vector.extract_strided_slice %78 {offsets = [9, 0], sizes = [1, 128], strides = [1, 1]} : vector<10x128xf32> to vector<1x128xf32>
    %85 = vector.shape_cast %84 : vector<1x128xf32> to vector<128xf32>
    %86 = vector.shape_cast %85 : vector<128xf32> to vector<1x128xf32>
    %87 = vector.broadcast %86 : vector<1x128xf32> to vector<4x128xf32>
    %88 = arith.addf %83, %87 : vector<4x128xf32>
    %cst_17 = arith.constant 0.000000e+00 : f32
    %89 = vector.broadcast %cst_17 : f32 to vector<1x128xf32>
    %90 = vector.extract_strided_slice %77 {offsets = [0, 0], sizes = [3, 128], strides = [1, 1]} : vector<4x128xf32> to vector<3x128xf32>
    %91 = tpu.concatenate %89, %90 in 0 : vector<1x128xf32>, vector<3x128xf32> -> vector<4x128xf32>
    %c32_i32_18 = arith.constant 32 : i32
    %92 = tpu.dynamic_rotate %91 by %c32_i32_18 dim 1 : vector<4x128xf32>, i32 -> vector<4x128xf32>
    %93 = vector.extract_strided_slice %78 {offsets = [0, 0], sizes = [1, 128], strides = [1, 1]} : vector<10x128xf32> to vector<1x128xf32>
    %94 = vector.shape_cast %93 : vector<1x128xf32> to vector<128xf32>
    %95 = vector.shape_cast %94 : vector<128xf32> to vector<1x128xf32>
    %96 = vector.broadcast %95 : vector<1x128xf32> to vector<4x128xf32>
    %97 = arith.mulf %92, %96 : vector<4x128xf32>
    %98 = arith.addf %88, %97 : vector<4x128xf32>
    %99 = vector.extract_strided_slice %78 {offsets = [1, 0], sizes = [1, 128], strides = [1, 1]} : vector<10x128xf32> to vector<1x128xf32>
    %100 = vector.shape_cast %99 : vector<1x128xf32> to vector<128xf32>
    %101 = vector.shape_cast %100 : vector<128xf32> to vector<1x128xf32>
    %102 = vector.broadcast %101 : vector<1x128xf32> to vector<4x128xf32>
    %103 = arith.mulf %91, %102 : vector<4x128xf32>
    %104 = arith.addf %98, %103 : vector<4x128xf32>
    %c96_i32 = arith.constant 96 : i32
    %105 = tpu.dynamic_rotate %91 by %c96_i32 dim 1 : vector<4x128xf32>, i32 -> vector<4x128xf32>
    %106 = vector.extract_strided_slice %78 {offsets = [2, 0], sizes = [1, 128], strides = [1, 1]} : vector<10x128xf32> to vector<1x128xf32>
    %107 = vector.shape_cast %106 : vector<1x128xf32> to vector<128xf32>
    %108 = vector.shape_cast %107 : vector<128xf32> to vector<1x128xf32>
    %109 = vector.broadcast %108 : vector<1x128xf32> to vector<4x128xf32>
    %110 = arith.mulf %105, %109 : vector<4x128xf32>
    %111 = arith.addf %104, %110 : vector<4x128xf32>
    %c32_i32_19 = arith.constant 32 : i32
    %112 = tpu.dynamic_rotate %77 by %c32_i32_19 dim 1 : vector<4x128xf32>, i32 -> vector<4x128xf32>
    %113 = vector.extract_strided_slice %78 {offsets = [3, 0], sizes = [1, 128], strides = [1, 1]} : vector<10x128xf32> to vector<1x128xf32>
    %114 = vector.shape_cast %113 : vector<1x128xf32> to vector<128xf32>
    %115 = vector.shape_cast %114 : vector<128xf32> to vector<1x128xf32>
    %116 = vector.broadcast %115 : vector<1x128xf32> to vector<4x128xf32>
    %117 = arith.mulf %112, %116 : vector<4x128xf32>
    %118 = arith.addf %111, %117 : vector<4x128xf32>
    %c96_i32_20 = arith.constant 96 : i32
    %119 = tpu.dynamic_rotate %77 by %c96_i32_20 dim 1 : vector<4x128xf32>, i32 -> vector<4x128xf32>
    %120 = vector.extract_strided_slice %78 {offsets = [5, 0], sizes = [1, 128], strides = [1, 1]} : vector<10x128xf32> to vector<1x128xf32>
    %121 = vector.shape_cast %120 : vector<1x128xf32> to vector<128xf32>
    %122 = vector.shape_cast %121 : vector<128xf32> to vector<1x128xf32>
    %123 = vector.broadcast %122 : vector<1x128xf32> to vector<4x128xf32>
    %124 = arith.mulf %119, %123 : vector<4x128xf32>
    %125 = arith.addf %118, %124 : vector<4x128xf32>
    %cst_21 = arith.constant 0.000000e+00 : f32
    %126 = vector.broadcast %cst_21 : f32 to vector<1x128xf32>
    %127 = vector.extract_strided_slice %77 {offsets = [1, 0], sizes = [3, 128], strides = [1, 1]} : vector<4x128xf32> to vector<3x128xf32>
    %128 = tpu.concatenate %127, %126 in 0 : vector<3x128xf32>, vector<1x128xf32> -> vector<4x128xf32>
    %c32_i32_22 = arith.constant 32 : i32
    %129 = tpu.dynamic_rotate %128 by %c32_i32_22 dim 1 : vector<4x128xf32>, i32 -> vector<4x128xf32>
    %130 = vector.extract_strided_slice %78 {offsets = [6, 0], sizes = [1, 128], strides = [1, 1]} : vector<10x128xf32> to vector<1x128xf32>
    %131 = vector.shape_cast %130 : vector<1x128xf32> to vector<128xf32>
    %132 = vector.shape_cast %131 : vector<128xf32> to vector<1x128xf32>
    %133 = vector.broadcast %132 : vector<1x128xf32> to vector<4x128xf32>
    %134 = arith.mulf %129, %133 : vector<4x128xf32>
    %135 = arith.addf %125, %134 : vector<4x128xf32>
    %136 = vector.extract_strided_slice %78 {offsets = [7, 0], sizes = [1, 128], strides = [1, 1]} : vector<10x128xf32> to vector<1x128xf32>
    %137 = vector.shape_cast %136 : vector<1x128xf32> to vector<128xf32>
    %138 = vector.shape_cast %137 : vector<128xf32> to vector<1x128xf32>
    %139 = vector.broadcast %138 : vector<1x128xf32> to vector<4x128xf32>
    %140 = arith.mulf %128, %139 : vector<4x128xf32>
    %141 = arith.addf %135, %140 : vector<4x128xf32>
    %c96_i32_23 = arith.constant 96 : i32
    %142 = tpu.dynamic_rotate %128 by %c96_i32_23 dim 1 : vector<4x128xf32>, i32 -> vector<4x128xf32>
    %143 = vector.extract_strided_slice %78 {offsets = [8, 0], sizes = [1, 128], strides = [1, 1]} : vector<10x128xf32> to vector<1x128xf32>
    %144 = vector.shape_cast %143 : vector<1x128xf32> to vector<128xf32>
    %145 = vector.shape_cast %144 : vector<128xf32> to vector<1x128xf32>
    %146 = vector.broadcast %145 : vector<1x128xf32> to vector<4x128xf32>
    %147 = arith.mulf %142, %146 : vector<4x128xf32>
    %148 = arith.addf %141, %147 : vector<4x128xf32>
    %c0_24 = arith.constant 0 : index
    %c0_25 = arith.constant 0 : index
    %c0_26 = arith.constant 0 : index
    %149 = vector.load %arg8[%c0_24, %c0_25, %c0_26] : memref<1x4x128xf32, #tpu.memory_space<vmem>>, vector<1x4x128xf32>
    %150 = vector.shape_cast %149 : vector<1x4x128xf32> to vector<4x128xf32>
    %151 = vector.shape_cast %148 : vector<4x128xf32> to vector<1x4x128xf32>
    tpu.vector_store %arg8[%c0_24, %c0_25, %c0_26], %151 {strides = array<i32>} : memref<1x4x128xf32, #tpu.memory_space<vmem>>, vector<1x4x128xf32>,
    %c0_27 = arith.constant 0 : index
    %c0_28 = arith.constant 0 : index
    %c0_29 = arith.constant 0 : index
    %152 = vector.load %arg3[%c0_27, %c0_28, %c0_29] : memref<1x2x64xf32, #tpu.memory_space<vmem>>, vector<1x2x64xf32>
    %153 = vector.shape_cast %152 : vector<1x2x64xf32> to vector<2x64xf32>
    %c0_30 = arith.constant 0 : index
    %c0_31 = arith.constant 0 : index
    %154 = vector.load %arg6[%c0_30, %c0_31] : memref<10x64xf32, #tpu.memory_space<vmem>>, vector<10x64xf32>
    %155 = vector.extract_strided_slice %154 {offsets = [4, 0], sizes = [1, 64], strides = [1, 1]} : vector<10x64xf32> to vector<1x64xf32>
    %156 = vector.shape_cast %155 : vector<1x64xf32> to vector<64xf32>
    %157 = vector.shape_cast %156 : vector<64xf32> to vector<1x64xf32>
    %158 = vector.broadcast %157 : vector<1x64xf32> to vector<2x64xf32>
    %159 = arith.mulf %153, %158 : vector<2x64xf32>
    %160 = vector.extract_strided_slice %154 {offsets = [9, 0], sizes = [1, 64], strides = [1, 1]} : vector<10x64xf32> to vector<1x64xf32>
    %161 = vector.shape_cast %160 : vector<1x64xf32> to vector<64xf32>
    %162 = vector.shape_cast %161 : vector<64xf32> to vector<1x64xf32>
    %163 = vector.broadcast %162 : vector<1x64xf32> to vector<2x64xf32>
    %164 = arith.addf %159, %163 : vector<2x64xf32>
    %cst_32 = arith.constant 0.000000e+00 : f32
    %165 = vector.broadcast %cst_32 : f32 to vector<1x64xf32>
    %166 = vector.extract_strided_slice %153 {offsets = [0, 0], sizes = [1, 64], strides = [1, 1]} : vector<2x64xf32> to vector<1x64xf32>
    %167 = tpu.concatenate %165, %166 in 0 : vector<1x64xf32>, vector<1x64xf32> -> vector<2x64xf32>
    %168 = vector.extract_strided_slice %167 {offsets = [0, 32], sizes = [2, 32], strides = [1, 1]} : vector<2x64xf32> to vector<2x32xf32>
    %169 = vector.extract_strided_slice %167 {offsets = [0, 0], sizes = [2, 32], strides = [1, 1]} : vector<2x64xf32> to vector<2x32xf32>
    %170 = tpu.concatenate %168, %169 in 1 : vector<2x32xf32>, vector<2x32xf32> -> vector<2x64xf32>
    %171 = vector.extract_strided_slice %154 {offsets = [0, 0], sizes = [1, 64], strides = [1, 1]} : vector<10x64xf32> to vector<1x64xf32>
    %172 = vector.shape_cast %171 : vector<1x64xf32> to vector<64xf32>
    %173 = vector.shape_cast %172 : vector<64xf32> to vector<1x64xf32>
    %174 = vector.broadcast %173 : vector<1x64xf32> to vector<2x64xf32>
    %175 = arith.mulf %170, %174 : vector<2x64xf32>
    %176 = arith.addf %164, %175 : vector<2x64xf32>
    %177 = vector.extract_strided_slice %154 {offsets = [1, 0], sizes = [1, 64], strides = [1, 1]} : vector<10x64xf32> to vector<1x64xf32>
    %178 = vector.shape_cast %177 : vector<1x64xf32> to vector<64xf32>
    %179 = vector.shape_cast %178 : vector<64xf32> to vector<1x64xf32>
    %180 = vector.broadcast %179 : vector<1x64xf32> to vector<2x64xf32>
    %181 = arith.mulf %167, %180 : vector<2x64xf32>
    %182 = arith.addf %176, %181 : vector<2x64xf32>
    %183 = vector.extract_strided_slice %167 {offsets = [0, 32], sizes = [2, 32], strides = [1, 1]} : vector<2x64xf32> to vector<2x32xf32>
    %184 = vector.extract_strided_slice %167 {offsets = [0, 0], sizes = [2, 32], strides = [1, 1]} : vector<2x64xf32> to vector<2x32xf32>
    %185 = tpu.concatenate %183, %184 in 1 : vector<2x32xf32>, vector<2x32xf32> -> vector<2x64xf32>
    %186 = vector.extract_strided_slice %154 {offsets = [2, 0], sizes = [1, 64], strides = [1, 1]} : vector<10x64xf32> to vector<1x64xf32>
    %187 = vector.shape_cast %186 : vector<1x64xf32> to vector<64xf32>
    %188 = vector.shape_cast %187 : vector<64xf32> to vector<1x64xf32>
    %189 = vector.broadcast %188 : vector<1x64xf32> to vector<2x64xf32>
    %190 = arith.mulf %185, %189 : vector<2x64xf32>
    %191 = arith.addf %182, %190 : vector<2x64xf32>
    %192 = vector.extract_strided_slice %153 {offsets = [0, 32], sizes = [2, 32], strides = [1, 1]} : vector<2x64xf32> to vector<2x32xf32>
    %193 = vector.extract_strided_slice %153 {offsets = [0, 0], sizes = [2, 32], strides = [1, 1]} : vector<2x64xf32> to vector<2x32xf32>
    %194 = tpu.concatenate %192, %193 in 1 : vector<2x32xf32>, vector<2x32xf32> -> vector<2x64xf32>
    %195 = vector.extract_strided_slice %154 {offsets = [3, 0], sizes = [1, 64], strides = [1, 1]} : vector<10x64xf32> to vector<1x64xf32>
    %196 = vector.shape_cast %195 : vector<1x64xf32> to vector<64xf32>
    %197 = vector.shape_cast %196 : vector<64xf32> to vector<1x64xf32>
    %198 = vector.broadcast %197 : vector<1x64xf32> to vector<2x64xf32>
    %199 = arith.mulf %194, %198 : vector<2x64xf32>
    %200 = arith.addf %191, %199 : vector<2x64xf32>
    %201 = vector.extract_strided_slice %153 {offsets = [0, 32], sizes = [2, 32], strides = [1, 1]} : vector<2x64xf32> to vector<2x32xf32>
    %202 = vector.extract_strided_slice %153 {offsets = [0, 0], sizes = [2, 32], strides = [1, 1]} : vector<2x64xf32> to vector<2x32xf32>
    %203 = tpu.concatenate %201, %202 in 1 : vector<2x32xf32>, vector<2x32xf32> -> vector<2x64xf32>
    %204 = vector.extract_strided_slice %154 {offsets = [5, 0], sizes = [1, 64], strides = [1, 1]} : vector<10x64xf32> to vector<1x64xf32>
    %205 = vector.shape_cast %204 : vector<1x64xf32> to vector<64xf32>
    %206 = vector.shape_cast %205 : vector<64xf32> to vector<1x64xf32>
    %207 = vector.broadcast %206 : vector<1x64xf32> to vector<2x64xf32>
    %208 = arith.mulf %203, %207 : vector<2x64xf32>
    %209 = arith.addf %200, %208 : vector<2x64xf32>
    %cst_33 = arith.constant 0.000000e+00 : f32
    %210 = vector.broadcast %cst_33 : f32 to vector<1x64xf32>
    %211 = vector.extract_strided_slice %153 {offsets = [1, 0], sizes = [1, 64], strides = [1, 1]} : vector<2x64xf32> to vector<1x64xf32>
    %212 = tpu.concatenate %211, %210 in 0 : vector<1x64xf32>, vector<1x64xf32> -> vector<2x64xf32>
    %213 = vector.extract_strided_slice %212 {offsets = [0, 32], sizes = [2, 32], strides = [1, 1]} : vector<2x64xf32> to vector<2x32xf32>
    %214 = vector.extract_strided_slice %212 {offsets = [0, 0], sizes = [2, 32], strides = [1, 1]} : vector<2x64xf32> to vector<2x32xf32>
    %215 = tpu.concatenate %213, %214 in 1 : vector<2x32xf32>, vector<2x32xf32> -> vector<2x64xf32>
    %216 = vector.extract_strided_slice %154 {offsets = [6, 0], sizes = [1, 64], strides = [1, 1]} : vector<10x64xf32> to vector<1x64xf32>
    %217 = vector.shape_cast %216 : vector<1x64xf32> to vector<64xf32>
    %218 = vector.shape_cast %217 : vector<64xf32> to vector<1x64xf32>
    %219 = vector.broadcast %218 : vector<1x64xf32> to vector<2x64xf32>
    %220 = arith.mulf %215, %219 : vector<2x64xf32>
    %221 = arith.addf %209, %220 : vector<2x64xf32>
    %222 = vector.extract_strided_slice %154 {offsets = [7, 0], sizes = [1, 64], strides = [1, 1]} : vector<10x64xf32> to vector<1x64xf32>
    %223 = vector.shape_cast %222 : vector<1x64xf32> to vector<64xf32>
    %224 = vector.shape_cast %223 : vector<64xf32> to vector<1x64xf32>
    %225 = vector.broadcast %224 : vector<1x64xf32> to vector<2x64xf32>
    %226 = arith.mulf %212, %225 : vector<2x64xf32>
    %227 = arith.addf %221, %226 : vector<2x64xf32>
    %228 = vector.extract_strided_slice %212 {offsets = [0, 32], sizes = [2, 32], strides = [1, 1]} : vector<2x64xf32> to vector<2x32xf32>
    %229 = vector.extract_strided_slice %212 {offsets = [0, 0], sizes = [2, 32], strides = [1, 1]} : vector<2x64xf32> to vector<2x32xf32>
    %230 = tpu.concatenate %228, %229 in 1 : vector<2x32xf32>, vector<2x32xf32> -> vector<2x64xf32>
    %231 = vector.extract_strided_slice %154 {offsets = [8, 0], sizes = [1, 64], strides = [1, 1]} : vector<10x64xf32> to vector<1x64xf32>
    %232 = vector.shape_cast %231 : vector<1x64xf32> to vector<64xf32>
    %233 = vector.shape_cast %232 : vector<64xf32> to vector<1x64xf32>
    %234 = vector.broadcast %233 : vector<1x64xf32> to vector<2x64xf32>
    %235 = arith.mulf %230, %234 : vector<2x64xf32>
    %236 = arith.addf %227, %235 : vector<2x64xf32>
    %c0_34 = arith.constant 0 : index
    %c0_35 = arith.constant 0 : index
    %c0_36 = arith.constant 0 : index
    %237 = vector.load %arg9[%c0_34, %c0_35, %c0_36] : memref<1x2x64xf32, #tpu.memory_space<vmem>>, vector<1x2x64xf32>
    %238 = vector.shape_cast %237 : vector<1x2x64xf32> to vector<2x64xf32>
    %239 = vector.shape_cast %236 : vector<2x64xf32> to vector<1x2x64xf32>
    tpu.vector_store %arg9[%c0_34, %c0_35, %c0_36], %239 {strides = array<i32>} : memref<1x2x64xf32, #tpu.memory_space<vmem>>, vector<1x2x64xf32>,
    return
  }
  func.func @transform_0(%arg0: i32) -> (i32, i32, i32) {
    %c0_i32 = arith.constant 0 : i32
    %c0_i32_0 = arith.constant 0 : i32
    %c0_i32_1 = arith.constant 0 : i32
    return %arg0, %c0_i32, %c0_i32_0 : i32, i32, i32
  }
  func.func @transform_1(%arg0: i32) -> (i32, i32, i32) {
    %c0_i32 = arith.constant 0 : i32
    %c0_i32_0 = arith.constant 0 : i32
    %c0_i32_1 = arith.constant 0 : i32
    return %arg0, %c0_i32, %c0_i32_0 : i32, i32, i32
  }
  func.func @transform_2(%arg0: i32) -> (i32, i32, i32) {
    %c0_i32 = arith.constant 0 : i32
    %c0_i32_0 = arith.constant 0 : i32
    %c0_i32_1 = arith.constant 0 : i32
    return %arg0, %c0_i32, %c0_i32_0 : i32, i32, i32
  }
  func.func @transform_3(%arg0: i32) -> (i32, i32) {
    %c0_i32 = arith.constant 0 : i32
    %c0_i32_0 = arith.constant 0 : i32
    %c0_i32_1 = arith.constant 0 : i32
    return %c0_i32, %c0_i32_0 : i32, i32
  }
  func.func @transform_4(%arg0: i32) -> (i32, i32) {
    %c0_i32 = arith.constant 0 : i32
    %c0_i32_0 = arith.constant 0 : i32
    %c0_i32_1 = arith.constant 0 : i32
    return %c0_i32, %c0_i32_0 : i32, i32
  }
  func.func @transform_5(%arg0: i32) -> (i32, i32) {
    %c0_i32 = arith.constant 0 : i32
    %c0_i32_0 = arith.constant 0 : i32
    %c0_i32_1 = arith.constant 0 : i32
    return %c0_i32, %c0_i32_0 : i32, i32
  }
  func.func @transform_6(%arg0: i32) -> (i32, i32, i32) {
    %c0_i32 = arith.constant 0 : i32
    %c0_i32_0 = arith.constant 0 : i32
    %c0_i32_1 = arith.constant 0 : i32
    return %arg0, %c0_i32, %c0_i32_0 : i32, i32, i32
  }
  func.func @transform_7(%arg0: i32) -> (i32, i32, i32) {
    %c0_i32 = arith.constant 0 : i32
    %c0_i32_0 = arith.constant 0 : i32
    %c0_i32_1 = arith.constant 0 : i32
    return %arg0, %c0_i32, %c0_i32_0 : i32, i32, i32
  }
  func.func @transform_8(%arg0: i32) -> (i32, i32, i32) {
    %c0_i32 = arith.constant 0 : i32
    %c0_i32_0 = arith.constant 0 : i32
    %c0_i32_1 = arith.constant 0 : i32
    return %arg0, %c0_i32, %c0_i32_0 : i32, i32, i32
  }
}

</mosaic_0001>

<bundles_post_ra>
// kernel: spatial_feat_pyramid_dwconv.1
= control target key start
LH: loop header
LB: loop body
LE: loop exit
PB: predicated region body
PF: predicated region fallthrough
CT: control target
= control target key end

     0   :  { %s940_s27 = smov 0   ;;  %s1229_s0 = inlined_call_operand.vmem [shape: f32[2,8,256], index: 0, kind: input, shape index: {}]   ;;  %s1230_s1 = inlined_call_operand.vmem [shape: f32[2,4,128], index: 1, kind: input, shape index: {}]   ;;  %s1231_s2 = inlined_call_operand.vmem [shape: f32[2,2,64], index: 2, kind: input, shape index: {}]   ;;  %s1232_s3 = inlined_call_operand.vmem [shape: f32[10,256], index: 3, kind: input, shape index: {}]   ;;  %s1233_s4 = inlined_call_operand.vmem [shape: f32[10,128], index: 4, kind: input, shape index: {}]   ;;  %s1234_s5 = inlined_call_operand.vmem [shape: f32[10,64], index: 5, kind: input, shape index: {}]   ;;  %s1235_s6 = inlined_call_operand.vmem [shape: f32[2,8,256], index: 6, kind: output, shape index: {0}]   ;;  %s1236_s7 = inlined_call_operand.vmem [shape: f32[2,4,128], index: 7, kind: output, shape index: {1}]   ;;  %s1237_s8 = inlined_call_operand.vmem [shape: f32[2,2,64], index: 8, kind: output, shape index: {2}]  }
   0x1 LB: > { %s858_s28 = sadd.s32 4294967295, %s891_s27   ;;  %p862_p0 = scmp.ge.s32.totalorder %s891_s27, 1  ;;  %s891_s27 = sphi %s940_s27, %s19_s27  }
   0x2   : > { %p285_p1 = scmp.lt.s32.totalorder %s891_s27, 3 }
   0x4   : > { %p286_p2 = pnand %p862_p0, %p285_p1 }
   0x5   : > { %p335_p3 = scmp.lt.s32.totalorder (!%p286_p2), %s858_s28, 1  ;;  %vm393_vm0 = vcmask (!%p286_p2), 1040384   ;;  %s893_s19 = smov (!%p286_p2), 96   ;;  %vm488_vm1 = vcmask (!%p286_p2), 1046528   ;;  %vm598_vm2 = vcmask (!%p286_p2), 1042432   ;;  %v367_v20 = vlaneseq (!%p286_p2)  ;;  %v1059_v23 = vld [vmem:[%s1234_s5] sm:$0xff] (!%p286_p2) }
   0x6   : > { %289 = sbr.rel (%p286_p2) target bundleno = 186 (0xba), region = 44  ;;  %s894_s20 = smov (!%p286_p2), 32   ;;  %v1064_v24 = vld [vmem:[%s1232_s3] sm:$0xff] (!%p286_p2)  ;;  %v1069_v25 = vld [vmem:[%s1232_s3 + $0x8] sm:$0xff] (!%p286_p2)  ;;  %v1088_v32 = vld [vmem:[%s1232_s3 + $0x10] sm:$0x3] (!%p286_p2) }
   0x7   : > { %v1053_v21 = vshrl.u32 (!%p286_p2), %v367_v20, 7  ;;  %v1076_v28 = vld [vmem:[%s1233_s4] sm:$0xff] (!%p286_p2)  ;;  %v1081_v29 = vld [vmem:[%s1234_s5 + $0x8] sm:$0x3] (!%p286_p2)  ;;  %v1093_v33 = vld [vmem:[%s1232_s3 + $0x18] sm:$0x3] (!%p286_p2) }
   0x8   : > { %v1095_v34 = vand.u32 (!%p286_p2), 127, %v367_v20  ;;  %v1112_v47 = vld [vmem:[%s1233_s4 + $0x8] sm:$0x3] (!%p286_p2)  ;;  %vm647_vm3 = vcmask (!%p286_p2), 261120   ;;  %vm715_vm6 = vcmask (!%p286_p2), 517120  }
   0x9   : > { %v369_v22 = vsub.s32 (!%p286_p2), 4, %v1053_v21  ;;  %v379_v26 = vsub.s32 (!%p286_p2), 1, %v1053_v21  ;;  %v1099_v36 = vsub.s32 (!%p286_p2), 0, %v1053_v21 }
   0xa   : > { %vm402_vm4 = vcmp.lt.s32.totalorder (!%p286_p2), %v1095_v34, 32  ;;  %vm433_vm5 = vcmp.lt.s32.totalorder (!%p286_p2), %v1095_v34, 96 }
   0xb   : > { %v629_v27 = vrot.slane (!%p286_p2), %v1059_v23, %v369_v22  ;;  %v370_v30 = vrot.slane (!%p286_p2), %v1064_v24, %v369_v22  ;;  %v374_v31 = vrot.slane (!%p286_p2), %v1069_v25, %v369_v22  ;;  %v658_v35 = vrot.slane (!%p286_p2), %v1059_v23, %v379_v26 }
   0xc   : > { %v420_v37 = vrot.slane (!%p286_p2), %v1064_v24, %v379_v26  ;;  %v634_v38 = vrot.slane (!%p286_p2), %v1081_v29, %v379_v26  ;;  %v547_v40 = vrot.slane (!%p286_p2), %v1076_v28, %v369_v22  ;;  %v380_v44 = vrot.slane (!%p286_p2), %v1088_v32, %v379_v26 }
   0xd   : > { %s1239_s28 = smov (!%p335_p3, %s858_s28), 1  ;;  %v384_v45 = vrot.slane %v1093_v33, %v379_v26  ;;  %v424_v48 = vrot.slane %v1069_v25, %v379_v26  ;;  %v652_v49 = vrot.slane %v1059_v23, %v1099_v36  ;;  %v408_v50 = vrot.slane %v1064_v24, %v1099_v36 }
   0xe   : > { %s866_s29 = sshll.u32 %s1239_s28, 1  ;;  %s873_s30 = sshll.u32 %s1239_s28, 4  ;;  %v412_v51 = vrot.slane %v1069_v25, %v1099_v36  ;;  %v569_v53 = vrot.slane %v1076_v28, %v379_v26  ;;  %v552_v55 = vrot.slane %v1112_v47, %v379_v26 }
   0xf   : > { %s347_s11 = scalar_lea.vmem %s1231_s2, %s866_s29  ;;  %s339_s14 = scalar_lea.vmem %s1229_s0, %s873_s30 }
  0x10   : > { %v962_v0 = vld [vmem:[%s347_s11] sm:$0x3]  ;;  %v966_v2 = vld [vmem:[%s339_s14 + $0x8] sm:$0xff]  ;;  %s865_s15 = sshll.u32 %s1239_s28, 2  ;;  %s360_s22 = scalar_lea.vmem %s1237_s8, %s866_s29 }
  0x11   : > { %v964_v1 = vld [vmem:[%s339_s14] sm:$0xff]  ;;  %v637_v3 = vrot.slane %v962_v0, 7  ;;  %v390_v5 = vrot.slane %v966_v2, 7  ;;  %s343_s18 = scalar_lea.vmem %s1230_s1, %s865_s15  ;;  %v485_v12 = vrot.slane %v966_v2, 1  ;;  %v686_v16 = vrot.slane %v962_v0, 1  ;;  %s356_s25 = scalar_lea.vmem %s1236_s7, %s865_s15 }
  0x12   : > { %v389_v4 = vrot.slane %v964_v1, 7  ;;  %v977_v6 = vld [vmem:[%s343_s18] sm:$0xf]  ;;  %v484_v13 = vrot.slane %v964_v1, 1  ;;  %v630_v39 = vmul.f32 %v629_v27, %v962_v0  ;;  %v376_v43 = vmul.f32 %v374_v31, %v966_v2  ;;  %s352_s9 = scalar_lea.vmem %s1235_s6, %s873_s30 }
  0x13   : > { %v980_v7 = vsel %vm393_vm0, 0.0, %v637_v3  ;;  %v990_v9 = vsel %vm393_vm0, 0.0, %v390_v5  ;;  %v555_v10 = vrot.slane %v977_v6, 7  ;;  %v1026_v14 = vsel %vm488_vm1, %v485_v12, 0.0 }
  0x14   : > { %v983_v8 = vsel %vm393_vm0, 0.0, %v389_v4  ;;  %641 = vrot.lane.b32.xlu1 %v980_v7, %s893_s19  ;;  %v1028_v15 = vsel %vm488_vm1, %v484_v13, 0.0  ;;  %v1036_v17 = vsel %vm393_vm0, %v686_v16, 0.0  ;;  %v596_v18 = vrot.slane %v977_v6, 1 }
  0x15   : > { %396 = vrot.lane.b32.xlu0 %v983_v8, %s894_s20  ;;  %v998_v11 = vsel %vm393_vm0, 0.0, %v555_v10  ;;  %v375_v46 = vmul.f32 %v370_v30, %v964_v1  ;;  %v659_v52 = vmul.f32 %v658_v35, %v980_v7  ;;  %v548_v54 = vmul.f32 %v547_v40, %v977_v6 }
  0x16   : > { %v1043_v19 = vsel %vm598_vm2, %v596_v18, 0.0  ;;  %v425_v56 = vmul.f32 %v420_v37, %v983_v8  ;;  %v635_v58 = vadd.f32 %v634_v38, %v630_v39  ;;  %v386_v59 = vadd.f32 %v384_v45, %v376_v43 }
  0x17   : > { %v385_v61 = vadd.f32 %v380_v44, %v375_v46  ;;  %v570_v16 = vmul.f32 %v569_v53, %v998_v11  ;;  %v1139_v38 = vsub.s32 7, %v1053_v21  ;;  %v438_v39 = vsub.s32 2, %v1053_v21 }
  0x18   : > { %644 = vrot.lane.b32.xlu1 %v980_v7, %s894_s20 }
  0x19   : > { %398 = vrot.lane.b32.xlu0 %v990_v9, %s894_s20  ;;  %v439_v43 = vrot.slane %v1064_v24, %v438_v39  ;;  %v443_v44 = vrot.slane %v1069_v25, %v438_v39  ;;  %v512_v45 = vrot.slane %v1064_v24, %v1139_v38 }
  0x1c   : > { %429 = vrot.lane.b32.xlu1 %v983_v8, %s893_s19 }
  0x1d   : > { %558 = vrot.lane.b32.xlu0 %v998_v11, %s894_s20 }
  0x20   : > { %572 = vrot.lane.b32.xlu1 %v998_v11, %s893_s19  ;;  %v456_v11 = vsub.s32 3, %v1053_v21 }
  0x21   : > { %431 = vrot.lane.b32.xlu0 %v990_v9, %s893_s19 }
  0x24   : > { %450 = vrot.lane.b32.xlu1 %v966_v2, %s894_s20 }
  0x25   : > { %448 = vrot.lane.b32.xlu0 %v964_v1, %s894_s20 }
  0x28   : > { %670 = vrot.lane.b32.xlu1 %v962_v0, %s894_s20 }
  0x29   : > { %667 = vrot.lane.b32.xlu0 %v962_v0, %s893_s19 }
  0x2c   : > { %466 = vrot.lane.b32.xlu1 %v964_v1, %s893_s19  ;;  %v563_v1 = vrot.slane %v1076_v28, %v1099_v36 }
  0x2d   : > { %580 = vrot.lane.b32.xlu0 %v977_v6, %s894_s20 }
  0x30   : > { %588 = vrot.lane.b32.xlu1 %v977_v6, %s893_s19  ;;  %v553_v6 = vadd.f32 %v552_v55, %v548_v54  ;;  %v1159_v55 = vsub.s32 6, %v1053_v21 }
  0x31   : > { %468 = vrot.lane.b32.xlu0 %v966_v2, %s893_s19  ;;  %v426_v2 = vmul.f32 %v424_v48, %v990_v9 }
  0x34   : > { %493 = vrot.lane.b32.xlu1 %v1026_v14, %s894_s20 }
  0x35   : > { %491 = vrot.lane.b32.xlu0 %v1028_v15, %s894_s20 }
  0x38   : > { %693 = vrot.lane.b32.xlu1 %v1036_v17, %s894_s20 }
  0x39   : > { %690 = vrot.lane.b32.xlu0 %v1036_v17, %s893_s19 }
  0x3c   : > { %521 = vrot.lane.b32.xlu1 %v1028_v15, %s893_s19 }
  0x3d   : > { %600 = vrot.lane.b32.xlu0 %v1043_v19, %s894_s20 }
  0x40   : > { %614 = vrot.lane.b32.xlu1 %v1043_v19, %s893_s19 }
  0x41   : > { %523 = vrot.lane.b32.xlu0 %v1026_v14, %s893_s19 }
  0x86   : > { %v642_v41 = vpop.permute.xlu1 %641 }
  0x87   : > { %v397_v42 = vpop.permute.xlu0 %396 }
  0x8a   : > { %v645_v57 = vpop.permute.xlu1 %644 }
  0x8b   : > { %v399_v60 = vpop.permute.xlu0 %398  ;;  %v648_v62 = vsel %vm647_vm3, %v642_v41, %v645_v57 }
  0x8c   : > { %v403_v63 = vsel %vm402_vm4, %v397_v42, %v399_v60  ;;  %v404_v0 = vsel %vm402_vm4, %v399_v60, %v397_v42  ;;  %v653_v3 = vmul.f32 %v652_v49, %v648_v62  ;;  %v516_v42 = vrot.slane %v1069_v25, %v1139_v38 }
  0x8d   : > { %v413_v4 = vmul.f32 %v408_v50, %v404_v0  ;;  %v414_v5 = vmul.f32 %v412_v51, %v403_v63  ;;  %v474_v49 = vsub.s32 5, %v1053_v21  ;;  %v664_v50 = vrot.slane %v1059_v23, %v438_v39 }
  0x8e   : > { %v654_v7 = vadd.f32 %v653_v3, %v635_v58  ;;  %v430_v12 = vpop.permute.xlu1 %429  ;;  %v457_v51 = vrot.slane %v1064_v24, %v456_v11  ;;  %v677_v58 = vrot.slane %v1059_v23, %v456_v11  ;;  %v517_v21 = vmul.f32 %v512_v45, %v1028_v15 }
  0x8f   : > { %v415_v8 = vadd.f32 %v413_v4, %v385_v61  ;;  %v416_v10 = vadd.f32 %v414_v5, %v386_v59  ;;  %v559_v13 = vpop.permute.xlu0 %558  ;;  %v475_v59 = vrot.slane %v1064_v24, %v474_v49  ;;  %v479_v0 = vrot.slane %v1069_v25, %v474_v49 }
  0x90   : > { %v564_v18 = vmul.f32 %v563_v1, %v559_v13  ;;  %v660_v20 = vadd.f32 %v659_v52, %v654_v7  ;;  %v461_v52 = vrot.slane %v1069_v25, %v456_v11  ;;  %v518_v1 = vmul.f32 %v516_v42, %v1026_v14 }
  0x91   : > { %v428_v22 = vadd.f32 %v426_v2, %v416_v10  ;;  %v427_v26 = vadd.f32 %v425_v56, %v415_v8  ;;  %v577_v2 = vrot.slane %v1076_v28, %v438_v39  ;;  %v500_v7 = vrot.slane %v1064_v24, %v1159_v55 }
  0x92   : > { %v565_v27 = vadd.f32 %v564_v18, %v553_v6  ;;  %v573_v30 = vpop.permute.xlu1 %572  ;;  %v504_v8 = vrot.slane %v1069_v25, %v1159_v55  ;;  %v665_v10 = vmul.f32 %v664_v50, %v648_v62  ;;  %v683_v24 = vrot.slane %v1059_v23, %v474_v49 }
  0x93   : > { %v432_v31 = vpop.permute.xlu0 %431  ;;  %v585_v25 = vrot.slane %v1076_v28, %v456_v11  ;;  %v593_v39 = vrot.slane %v1076_v28, %v474_v49  ;;  %v611_v49 = vrot.slane %v1076_v28, %v1139_v38 }
  0x94   : > { %v1136_v35 = vadd.f32 %v570_v16, %v565_v27  ;;  %v434_v46 = vsel %vm433_vm5, %v430_v12, %v432_v31  ;;  %v435_v48 = vsel %vm433_vm5, %v432_v31, %v430_v12  ;;  %v706_v31 = vrot.slane %v1059_v23, %v1139_v38 }
  0x95   : > { %v444_v60 = vmul.f32 %v439_v43, %v434_v46  ;;  %v445_v61 = vmul.f32 %v443_v44, %v435_v48 }
  0x96   : > { %v451_v9 = vpop.permute.xlu1 %450  ;;  %v707_v48 = vmul.f32 %v706_v31, %v1036_v17  ;;  %v605_v17 = vrot.slane %v1076_v28, %v1159_v55  ;;  %v530_v28 = vrot.slane %v1088_v32, %v1099_v36 }
  0x97   : > { %v449_v37 = vpop.permute.xlu0 %448  ;;  %v446_v15 = vadd.f32 %v444_v60, %v427_v26  ;;  %v447_v16 = vadd.f32 %v445_v61, %v428_v22  ;;  %v700_v26 = vrot.slane %v1059_v23, %v1159_v55  ;;  %v578_v22 = vmul.f32 %v577_v2, %v573_v30 }
  0x98   : > { %v452_v56 = vsel %vm402_vm4, %v449_v37, %v451_v9  ;;  %v453_v57 = vsel %vm402_vm4, %v451_v9, %v449_v37  ;;  %v666_v9 = vadd.f32 %v665_v10, %v660_v20  ;;  %v534_v55 = vrot.slane %v1093_v33, %v1099_v36 }
  0x99   : > { %v462_v3 = vmul.f32 %v457_v51, %v453_v57  ;;  %v463_v4 = vmul.f32 %v461_v52, %v452_v56  ;;  %v579_v57 = vadd.f32 %v578_v22, %v1136_v35  ;;  %v619_v35 = vrot.slane %v1112_v47, %v1099_v36 }
  0x9a   : > { %v671_v40 = vpop.permute.xlu1 %670 }
  0x9b   : > { %v668_v41 = vpop.permute.xlu0 %667  ;;  %v464_v62 = vadd.f32 %v462_v3, %v446_v15  ;;  %v465_v37 = vadd.f32 %v463_v4, %v447_v16 }
  0x9c   : > { %v673_v63 = vsel %vm647_vm3, %v668_v41, %v671_v40 }
  0x9d   : > { %v678_v12 = vmul.f32 %v677_v58, %v673_v63  ;;  %v684_v51 = vmul.f32 %v683_v24, %v673_v63 }
  0x9e   : > { %v467_v53 = vpop.permute.xlu1 %466 }
  0x9f   : > { %v581_v54 = vpop.permute.xlu0 %580  ;;  %v679_v42 = vadd.f32 %v678_v12, %v666_v9 }
  0xa0   : > { %v586_v50 = vmul.f32 %v585_v25, %v581_v54 }
  0xa1   : > { %v685_v60 = vadd.f32 %v684_v51, %v679_v42 }
  0xa2   : > { %v589_v5 = vpop.permute.xlu1 %588  ;;  %v587_v63 = vadd.f32 %v586_v50, %v579_v57 }
  0xa3   : > { %v469_v6 = vpop.permute.xlu0 %468  ;;  %v594_v58 = vmul.f32 %v593_v39, %v589_v5 }
  0xa4   : > { %v470_v13 = vsel %vm433_vm5, %v467_v53, %v469_v6  ;;  %v471_v14 = vsel %vm433_vm5, %v469_v6, %v467_v53  ;;  %v712_v53 = vrot.slane %v1081_v29, %v1099_v36  ;;  %v612_v29 = vmul.f32 %v611_v49, %v1043_v19 }
  0xa5   : > { %v480_v18 = vmul.f32 %v475_v59, %v470_v13  ;;  %v481_v27 = vmul.f32 %v479_v0, %v471_v14  ;;  %v595_v4 = vadd.f32 %v594_v58, %v587_v63 }
  0xa6   : > { %v494_v40 = vpop.permute.xlu1 %493 }
  0xa7   : > { %v492_v41 = vpop.permute.xlu0 %491  ;;  %v482_v44 = vadd.f32 %v480_v18, %v464_v62  ;;  %v483_v45 = vadd.f32 %v481_v27, %v465_v37 }
  0xa8   : > { %v495_v43 = vsel %vm402_vm4, %v492_v41, %v494_v40  ;;  %v496_v20 = vsel %vm402_vm4, %v494_v40, %v492_v41 }
  0xa9   : > { %v505_v11 = vmul.f32 %v500_v7, %v496_v20  ;;  %v506_v46 = vmul.f32 %v504_v8, %v495_v43 }
  0xaa   : > { %v694_v52 = vpop.permute.xlu1 %693 }
  0xab   : > { %v507_v23 = vadd.f32 %v505_v11, %v482_v44  ;;  %v508_v30 = vadd.f32 %v506_v46, %v483_v45  ;;  %v691_v56 = vpop.permute.xlu0 %690 }
  0xac   : > { %v696_v59 = vsel %vm647_vm3, %v691_v56, %v694_v52 }
  0xad   : > { %v701_v38 = vmul.f32 %v700_v26, %v696_v59  ;;  %v520_v54 = vadd.f32 %v518_v1, %v508_v30  ;;  %v519_v61 = vadd.f32 %v517_v21, %v507_v23  ;;  %v713_v7 = vmul.f32 %v712_v53, %v696_v59 }
  0xae   : > { %v522_v2 = vpop.permute.xlu1 %521 }
  0xaf   : > { %v702_v0 = vadd.f32 %v701_v38, %v685_v60  ;;  %v601_v3 = vpop.permute.xlu0 %600 }
  0xb0   : > { %v606_v6 = vmul.f32 %v605_v17, %v601_v3 }
  0xb1   : > { %v708_v5 = vadd.f32 %v707_v48, %v702_v0 }
  0xb2   : > { %v607_v19 = vadd.f32 %v606_v6, %v595_v4  ;;  %v615_v21 = vpop.permute.xlu1 %614 }
  0xb3   : > { %v714_v1 = vadd.f32 %v713_v7, %v708_v5  ;;  %v524_v47 = vpop.permute.xlu0 %523  ;;  %v620_v10 = vmul.f32 %v619_v35, %v615_v21 }
  0xb4   : > { %v613_v8 = vadd.f32 %v612_v29, %v607_v19  ;;  %v525_v12 = vsel %vm433_vm5, %v522_v2, %v524_v47  ;;  %v526_v32 = vsel %vm433_vm5, %v524_v47, %v522_v2 }
  0xb5   : > { %716 = vst.msk [vmem:[%s360_s22] sm:$0x3] %vm715_vm6, %v714_v1  ;;  %v535_v33 = vmul.f32 %v530_v28, %v525_v12  ;;  %v536_v36 = vmul.f32 %v534_v55, %v526_v32 }
  0xb6   : > { %v621_v13 = vadd.f32 %v620_v10, %v613_v8 }
  0xb7   : > { %v537_v14 = vadd.f32 %v535_v33, %v519_v61  ;;  %v538_v15 = vadd.f32 %v536_v36, %v520_v54 }
  0xb8   : > { %622 = vst [vmem:[%s356_s25] sm:$0xf] %v621_v13 }
  0xb9   : > { %539 = vst [vmem:[%s352_s9] sm:$0xff] %v537_v14  ;;  %540 = vst [vmem:[%s352_s9 + $0x8] sm:$0xff] %v538_v15 }
  0xba PF: > { %s19_s27 = sadd.s32 1, %s891_s27  }
  0xbb   : > { %p16_p4 = scmp.ge.s32.totalorder %s19_s27, 4  }
  0xbd   :  { %18 = sbr.rel (!%p16_p4) target bundleno = 1 (0x1), region = 104 }

</bundles_post_ra>
